<compile_context>
chip_gen: v7x
topology: tpu7x:2x2x1
jax: 0.10.0
libtpu: 0.0.40
codegen_flags: <defaults>
</compile_context>

<pallas_src>
import jax
import jax.numpy as jnp
from jax.experimental import pallas as pl
from jax.experimental.pallas import tpu as pltpu

_LANES = 128
_DEF_MEAN = (0.0, 0.0, 0.0, 0.0)
_DEF_STD = (0.1, 0.1, 0.2, 0.2)


def _round_up(x, m):
    return ((x + m - 1) // m) * m


def _make_decode_kernel(mean, std):
    mean = tuple(float(m) for m in mean)
    std = tuple(float(s) for s in std)

    def kernel(boxes_ref, deltas_ref, out_ref):
        # ---- (1, 128) per-lane constants: one vreg each, hoisted out of the
        # full-block math so the per-tile VALU work stays under the DMA. ----
        lane = jax.lax.broadcasted_iota(jnp.int32, (1, _LANES), 1)
        is_xy1 = (lane & 2) == 0                     # True on x1/y1 lanes
        sign = jnp.where(is_xy1, jnp.float32(-0.5), jnp.float32(0.5))
        size_sign = jnp.where(is_xy1, jnp.float32(1.0), jnp.float32(-1.0))

        def coord_const(vals):
            # Per-lane constant repeating the [c0, c1, c2, c3] coord pattern.
            v = [jnp.float32(x) for x in vals]
            if vals[0] == vals[1] == vals[2] == vals[3]:
                return v[0]
            lo = v[0] if vals[0] == vals[1] else jnp.where((lane & 1) == 0, v[0], v[1])
            hi = v[2] if vals[2] == vals[3] else jnp.where((lane & 1) == 0, v[2], v[3])
            return jnp.where(is_xy1, lo, hi)

        std_lane = coord_const(std)

        # ---- full-block math (casts to f32 in-kernel; free under DMA) ----
        b = boxes_ref[...].astype(jnp.float32)       # (R, 128) [x1,y1,x2,y2]*32
        d = deltas_ref[...].astype(jnp.float32)

        def swap2(v):
            # Within each 4-lane group swap the (x1,y1) pair with the (x2,y2)
            # pair: roll(v, 126)[l] = v[l+2], roll(v, 2)[l] = v[l-2].  The
            # cross-group wrap-around only lands on lanes the select discards.
            return jnp.where(is_xy1,
                             pltpu.roll(v, 126, axis=1),
                             pltpu.roll(v, 2, axis=1))

        bp = swap2(b)                                # partner coordinate
        ctr = 0.5 * (b + bp)                         # cx on x lanes, cy on y lanes
        size = (bp - b) * size_sign                  # w  on x lanes, h  on y lanes

        ds = d * std_lane                            # std-scaled deltas
        if any(m != 0.0 for m in mean):              # default mean is 0 -> folded away
            ds = ds + coord_const(mean)
        dps = swap2(ds)

        d_ctr = jnp.where(is_xy1, ds, dps)           # dx / dy on every lane
        d_sz = jnp.where(is_xy1, dps, ds)            # dw / dh on every lane

        # x1' = cx' - 0.5*w', x2' = cx' + 0.5*w'   (same for y / h)
        out_ref[...] = (ctr + (d_ctr + sign * jnp.exp(d_sz)) * size).astype(out_ref.dtype)

    return kernel


def bbox_transform(boxes, deltas, *, mean=_DEF_MEAN, std=_DEF_STD,
                   tile_rows=4096, out_dtype=jnp.float32):
    """boxes, deltas: (B, N, 4) -> pred_boxes: (B, N, 4) of `out_dtype`."""
    B, N, C = boxes.shape
    assert C == 4 and deltas.shape == boxes.shape

    total = B * N * 4
    pad = (-total) % _LANES                 # <= 127 elements, usually 0
    rows = (total + pad) // _LANES

    def to_rows(x):
        flat = x.reshape(-1)                # contiguous reshape: free
        if pad:
            flat = jnp.pad(flat, (0, pad))  # only for total % 128 != 0
        return flat.reshape(rows, _LANES)

    boxes_r = to_rows(boxes)
    deltas_r = to_rows(deltas)

    # Tile: multiple of 32 sublanes (covers f32/bf16/int8 packing), capped so
    # medium problems still get >= 4 grid steps (both v7x TCs busy, overlap),
    # and never larger than tile_rows (2 MiB f32 blocks at the default 4096).
    tr = min(tile_rows, _round_up(max(pl.cdiv(rows, 4), 1), 32))
    grid = pl.cdiv(rows, tr)                # ragged final block handled by Pallas

    spec = pl.BlockSpec((tr, _LANES), lambda i: (i, 0))

    bytes_accessed = (boxes_r.size * boxes_r.dtype.itemsize
                      + deltas_r.size * deltas_r.dtype.itemsize
                      + rows * _LANES * jnp.dtype(out_dtype).itemsize)

    out_r = pl.pallas_call(
        _make_decode_kernel(mean, std),
        out_shape=jax.ShapeDtypeStruct((rows, _LANES), out_dtype),
        grid_spec=pltpu.PrefetchScalarGridSpec(
            num_scalar_prefetch=0,
            grid=(grid,),
            in_specs=[spec, spec],
            out_specs=spec,
        ),
        compiler_params=pltpu.CompilerParams(
            dimension_semantics=("parallel",),
            vmem_limit_bytes=32 << 20,      # > v5e's 16 MiB scoped default
        ),
        cost_estimate=pl.CostEstimate(
            flops=12 * total, transcendentals=total, bytes_accessed=bytes_accessed),
    )(boxes_r, deltas_r)

    out = out_r.reshape(-1)
    if pad:
        out = out[:total]
    return out.reshape(B, N, 4)


def _bbox_transform_ref(boxes, deltas, mean=_DEF_MEAN, std=_DEF_STD):
    """Pure-JAX reference matching the PyTorch forward."""
    mean = jnp.asarray(mean, jnp.float32)
    std = jnp.asarray(std, jnp.float32)
    widths = boxes[..., 2] - boxes[..., 0]
    heights = boxes[..., 3] - boxes[..., 1]
    ctr_x = boxes[..., 0] + 0.5 * widths
    ctr_y = boxes[..., 1] + 0.5 * heights
    dx = deltas[..., 0] * std[0] + mean[0]
    dy = deltas[..., 1] * std[1] + mean[1]
    dw = deltas[..., 2] * std[2] + mean[2]
    dh = deltas[..., 3] * std[3] + mean[3]
    pred_ctr_x = ctr_x + dx * widths
    pred_ctr_y = ctr_y + dy * heights
    pred_w = jnp.exp(dw) * widths
    pred_h = jnp.exp(dh) * heights
    return jnp.stack([pred_ctr_x - 0.5 * pred_w,
                      pred_ctr_y - 0.5 * pred_h,
                      pred_ctr_x + 0.5 * pred_w,
                      pred_ctr_y + 0.5 * pred_h], axis=-1)


if __name__ == "__main__":
    key = jax.random.PRNGKey(0)
    k1, k2, k3 = jax.random.split(key, 3)

    B, N = 2, 256  # small deterministic test shapes
    # Build valid boxes (x1 < x2, y1 < y2).
    xy1 = jax.random.uniform(k1, (B, N, 2), jnp.float32, 0.0, 50.0)
    wh = jax.random.uniform(k2, (B, N, 2), jnp.float32, 1.0, 30.0)
    boxes = jnp.concatenate([xy1, xy1 + wh], axis=-1)  # (B, N, 4)
    deltas = jax.random.normal(k3, (B, N, 4), jnp.float32)

    out = jax.block_until_ready(bbox_transform(boxes, deltas))
    ref = _bbox_transform_ref(boxes, deltas)
    assert out.shape == (B, N, 4)
    assert jnp.allclose(out, ref, atol=1e-5, rtol=1e-5)

    # Odd anchor count (not a multiple of 32/128) to exercise the padded path.
    N2 = 250
    out2 = jax.block_until_ready(bbox_transform(boxes[:, :N2], deltas[:, :N2]))
    ref2 = _bbox_transform_ref(boxes[:, :N2], deltas[:, :N2])
    assert out2.shape == (B, N2, 4)
    assert jnp.allclose(out2, ref2, atol=1e-5, rtol=1e-5)

    print("KERNEL_OK")
</pallas_src>

<mosaic_0001>
module attributes {stable_mosaic.version = 11 : i64} {
  func.func @kernel(%arg0: i32, %arg1: memref<32x128xf32, #tpu.memory_space<vmem>>, %arg2: memref<32x128xf32, #tpu.memory_space<vmem>>, %arg3: memref<32x128xf32, #tpu.memory_space<vmem>>) attributes {dimension_semantics = [#tpu.dimension_semantics<parallel>], iteration_bounds = array<i64: 1>, scalar_prefetch = 0 : i64, scratch_operands = 0 : i64, tpu.core_type = #tpu.core_type<tc>, window_params = [{transform_indices = @transform_0, window_bounds = array<i64: 32, 128>}, {transform_indices = @transform_1, window_bounds = array<i64: 32, 128>}, {transform_indices = @transform_2, window_bounds = array<i64: 32, 128>}]} {
    %0 = tpu.iota {dimensions = array<i32: 1>} : vector<1x128xi32>
    %c2_i32 = arith.constant 2 : i32
    %1 = vector.broadcast %c2_i32 : i32 to vector<1x128xi32>
    %2 = arith.andi %0, %1 : vector<1x128xi32>
    %c0_i32 = arith.constant 0 : i32
    %3 = vector.broadcast %c0_i32 : i32 to vector<1x128xi32>
    %4 = arith.cmpi eq, %2, %3 : vector<1x128xi32>
    %cst = arith.constant -5.000000e-01 : f32
    %cst_0 = arith.constant 5.000000e-01 : f32
    %5 = vector.broadcast %cst : f32 to vector<1x128xf32>
    %6 = vector.broadcast %cst_0 : f32 to vector<1x128xf32>
    %7 = arith.select %4, %5, %6 : vector<1x128xi1>, vector<1x128xf32>
    %cst_1 = arith.constant 1.000000e+00 : f32
    %cst_2 = arith.constant -1.000000e+00 : f32
    %8 = vector.broadcast %cst_1 : f32 to vector<1x128xf32>
    %9 = vector.broadcast %cst_2 : f32 to vector<1x128xf32>
    %10 = arith.select %4, %8, %9 : vector<1x128xi1>, vector<1x128xf32>
    %cst_3 = arith.constant 1.000000e-01 : f32
    %cst_4 = arith.constant 2.000000e-01 : f32
    %11 = vector.broadcast %cst_3 : f32 to vector<1x128xf32>
    %12 = vector.broadcast %cst_4 : f32 to vector<1x128xf32>
    %13 = arith.select %4, %11, %12 : vector<1x128xi1>, vector<1x128xf32>
    %c0 = arith.constant 0 : index
    %c0_5 = arith.constant 0 : index
    %14 = vector.load %arg1[%c0, %c0_5] : memref<32x128xf32, #tpu.memory_space<vmem>>, vector<32x128xf32>
    %c0_6 = arith.constant 0 : index
    %c0_7 = arith.constant 0 : index
    %15 = vector.load %arg2[%c0_6, %c0_7] : memref<32x128xf32, #tpu.memory_space<vmem>>, vector<32x128xf32>
    %c126_i32 = arith.constant 126 : i32
    %16 = tpu.dynamic_rotate %14 by %c126_i32 dim 1 : vector<32x128xf32>, i32 -> vector<32x128xf32>
    %c2_i32_8 = arith.constant 2 : i32
    %17 = tpu.dynamic_rotate %14 by %c2_i32_8 dim 1 : vector<32x128xf32>, i32 -> vector<32x128xf32>
    %18 = vector.shape_cast %4 : vector<1x128xi1> to vector<1x128xi1>
    %19 = vector.broadcast %18 : vector<1x128xi1> to vector<32x128xi1>
    %20 = arith.select %19, %16, %17 : vector<32x128xi1>, vector<32x128xf32>
    %21 = arith.addf %14, %20 : vector<32x128xf32>
    %cst_9 = arith.constant 5.000000e-01 : f32
    %22 = vector.broadcast %cst_9 : f32 to vector<32x128xf32>
    %23 = arith.mulf %22, %21 : vector<32x128xf32>
    %24 = arith.subf %20, %14 : vector<32x128xf32>
    %25 = vector.broadcast %10 : vector<1x128xf32> to vector<32x128xf32>
    %26 = arith.mulf %24, %25 : vector<32x128xf32>
    %27 = vector.broadcast %13 : vector<1x128xf32> to vector<32x128xf32>
    %28 = arith.mulf %15, %27 : vector<32x128xf32>
    %c126_i32_10 = arith.constant 126 : i32
    %29 = tpu.dynamic_rotate %28 by %c126_i32_10 dim 1 : vector<32x128xf32>, i32 -> vector<32x128xf32>
    %c2_i32_11 = arith.constant 2 : i32
    %30 = tpu.dynamic_rotate %28 by %c2_i32_11 dim 1 : vector<32x128xf32>, i32 -> vector<32x128xf32>
    %31 = vector.shape_cast %4 : vector<1x128xi1> to vector<1x128xi1>
    %32 = vector.broadcast %31 : vector<1x128xi1> to vector<32x128xi1>
    %33 = arith.select %32, %29, %30 : vector<32x128xi1>, vector<32x128xf32>
    %34 = vector.shape_cast %4 : vector<1x128xi1> to vector<1x128xi1>
    %35 = vector.broadcast %34 : vector<1x128xi1> to vector<32x128xi1>
    %36 = arith.select %35, %28, %33 : vector<32x128xi1>, vector<32x128xf32>
    %37 = vector.shape_cast %4 : vector<1x128xi1> to vector<1x128xi1>
    %38 = vector.broadcast %37 : vector<1x128xi1> to vector<32x128xi1>
    %39 = arith.select %38, %33, %28 : vector<32x128xi1>, vector<32x128xf32>
    %40 = math.exp %39 : vector<32x128xf32>
    %41 = vector.broadcast %7 : vector<1x128xf32> to vector<32x128xf32>
    %42 = arith.mulf %41, %40 : vector<32x128xf32>
    %43 = arith.addf %36, %42 : vector<32x128xf32>
    %44 = arith.mulf %43, %26 : vector<32x128xf32>
    %45 = arith.addf %23, %44 : vector<32x128xf32>
    %c0_12 = arith.constant 0 : index
    %c0_13 = arith.constant 0 : index
    %46 = vector.load %arg3[%c0_12, %c0_13] : memref<32x128xf32, #tpu.memory_space<vmem>>, vector<32x128xf32>
    tpu.vector_store %arg3[%c0_12, %c0_13], %45 {strides = array<i32>} : memref<32x128xf32, #tpu.memory_space<vmem>>, vector<32x128xf32>,
    return
  }
  func.func @transform_0(%arg0: i32) -> (i32, i32) {
    %c0_i32 = arith.constant 0 : i32
    %c0_i32_0 = arith.constant 0 : i32
    return %arg0, %c0_i32 : i32, i32
  }
  func.func @transform_1(%arg0: i32) -> (i32, i32) {
    %c0_i32 = arith.constant 0 : i32
    %c0_i32_0 = arith.constant 0 : i32
    return %arg0, %c0_i32 : i32, i32
  }
  func.func @transform_2(%arg0: i32) -> (i32, i32) {
    %c0_i32 = arith.constant 0 : i32
    %c0_i32_0 = arith.constant 0 : i32
    return %arg0, %c0_i32 : i32, i32
  }
}

</mosaic_0001>

<bundles_post_ra>
// kernel: tpu_custom_call.1
= control target key start
LH: loop header
LB: loop body
LE: loop exit
PB: predicated region body
PF: predicated region fallthrough
CT: control target
= control target key end

     0   :  { %7 = vsyncpa [#allocation3], 0  ;;  %s409_s0 = inlined_call_operand.hbm [shape: f32[16,128], index: 0, kind: input, shape index: {}]   ;;  %s410_s1 = inlined_call_operand.hbm [shape: f32[16,128], index: 1, kind: input, shape index: {}]   ;;  %s411_s2 = inlined_call_operand.hbm [shape: f32[16,128], index: 2, kind: output, shape index: {}]  }
   0x1   :  { %8 = vsyncpa [#allocation6], 0 }
   0x2   :  { %9 = vsyncpa [#allocation4], 0 }
   0x3   :  { %14 = vsyncadd [#allocation3], 256  ;;  %s257_s9 = smov [#allocation2]   ;;  %s185_s13 = scalar_lea.hbm %s409_s0, 256 }
   0x4   :  { %s15_s10 = sshll.u32 %s257_s9, 4  ;;  %p186_p0 = scmp.ne.s32.totalorder %s409_s0, %s185_s13  ;;  %s16_s10 = int_to_ptr.vmem [resolvable:$true] %s15_s10 }
   0x5   :  { %p189_p1 = scmp.lt.u32.totalorder %s185_s13, %s409_s0 }
   0x7   :  { %p191_p2 = pnand %p189_p1, %p186_p0 }
   0x9   :  { %194 = shalt.err (!%p191_p2)
}
   0xa   :  { %s195_s18 = scalar_lea.vmem %s16_s10, 256  ;;  %s199_s19 = scalar_lea.vmem %s16_s10, 512 }
   0xb   :  { %p196_p3 = scmp.ne.s32.totalorder %s16_s10, %s195_s18  ;;  %p200_p4 = scmp.lt.s32.totalorder %s16_s10, %s16_s10 }
   0xc   :  { %p201_p5 = scmp.lt.s32.totalorder %s199_s19, %s195_s18 }
   0xe   :  { %p202_p6 = por %p201_p5, %p200_p4 }
  0x10   :  { %p203_p7 = pnand %p202_p6, %p196_p3 }
  0x12   :  { %206 = shalt.err (!%p203_p7)
}
  0x13   :  { %s258_s20 = smov 128   ;;  %s259_s21 = smov 8  }
  0x14   :  { %21 = dma.hbm_to_vmem [thread:$0]  %s409_s0, 256, %s16_s10, [#allocation3], %s258_s20, %s258_s20, %s259_s21  }
  0x15   :  { %26 = vsyncadd [#allocation6], 256  ;;  %s260_s24 = smov [#allocation5]   ;;  %s207_s28 = scalar_lea.hbm %s410_s1, 256 }
  0x16   :  { %s27_s25 = sshll.u32 %s260_s24, 4  ;;  %p208_p8 = scmp.ne.s32.totalorder %s410_s1, %s207_s28  ;;  %s28_s25 = int_to_ptr.vmem [resolvable:$true] %s27_s25 }
  0x17   :  { %p211_p9 = scmp.lt.u32.totalorder %s207_s28, %s410_s1 }
  0x19   :  { %p213_p10 = pnand %p211_p9, %p208_p8 }
  0x1b   :  { %216 = shalt.err (!%p213_p10)
}
  0x1c   :  { %s217_s5 = scalar_lea.vmem %s28_s25, 256  ;;  %s221_s0 = scalar_lea.vmem %s28_s25, 512 }
  0x1d   :  { %p218_p11 = scmp.ne.s32.totalorder %s28_s25, %s217_s5  ;;  %p222_p12 = scmp.lt.s32.totalorder %s28_s25, %s28_s25 }
  0x1e   :  { %p223_p13 = scmp.lt.s32.totalorder %s221_s0, %s217_s5 }
  0x20   :  { %p224_p0 = por %p223_p13, %p222_p12 }
  0x22   :  { %p225_p1 = pnand %p224_p0, %p218_p11 }
  0x24   :  { %228 = shalt.err (!%p225_p1)
}
  0x25   :  { %33 = dma.hbm_to_vmem [thread:$0]  %s410_s1, 256, %s28_s25, [#allocation6], %s258_s20, %s258_s20, %s259_s21  }
  0x26   :  { %251 = dma.done.wait [#allocation3], 512  }
  0x27   :  { %252 = vsyncadd [#allocation3], 4294966784 }
  0x28   :  { %253 = dma.done.wait [#allocation6], 512  }
  0x29   :  { %254 = vsyncadd [#allocation6], 4294966784  ;;  %v40_v0 = vlaneseq  ;;  %v316_v4 = vld [vmem:[#allocation2 + $0x8] sm:$0xff]  ;;  %v318_v5 = vld [vmem:[#allocation2] sm:$0xff]  ;;  %v261_v6 = vmov 0.2  }
  0x2a   :  { %v53_v8 = vld [vmem:[#allocation5 + $0x10] sm:$0xff]  ;;  %s262_s1 = smov 126   ;;  %v51_v10 = vld [vmem:[#allocation5] sm:$0xff]  ;;  %v54_v12 = vld [vmem:[#allocation5 + $0x18] sm:$0xff]  ;;  %s263_s8 = smov 2   ;;  %v264_v41 = vmov 0.5  }
  0x2b   :  { %v41_v1 = vand.u32 127, %v40_v0  ;;  %57 = vrot.lane.b32.xlu1 %v316_v4, %s262_s1  ;;  %55 = vrot.lane.b32.xlu0 %v318_v5, %s262_s1  ;;  %v52_v13 = vld [vmem:[#allocation5 + $0x8] sm:$0xff]  ;;  %v336_v16 = vld [vmem:[#allocation2 + $0x18] sm:$0xff]  ;;  %v338_v17 = vld [vmem:[#allocation2 + $0x10] sm:$0xff]  ;;  %v265_v44 = vmov -1.0  }
  0x2d   :  { %v42_v2 = vand.u32 2, %v41_v1 }
  0x2f   :  { %vm312_vm0 = vcmp.eq.s32.totalorder %v42_v2, 0 }
  0x30   :  { %v46_v7 = vsel %vm312_vm0, 0.1, %v261_v6  ;;  %v44_v42 = vsel %vm312_vm0, -0.5, %v264_v41  ;;  %v45_v45 = vsel %vm312_vm0, 1.0, %v265_v44 }
  0x31   :  { %v324_v9 = vmul.f32 %v53_v8, %v46_v7  ;;  %v326_v11 = vmul.f32 %v51_v10, %v46_v7  ;;  %v330_v14 = vmul.f32 %v54_v12, %v46_v7  ;;  %v332_v15 = vmul.f32 %v52_v13, %v46_v7 }
  0x33   :  { %101 = vrot.lane.b32.xlu1 %v324_v9, %s262_s1  ;;  %97 = vrot.lane.b32.xlu0 %v326_v11, %s262_s1 }
  0x37   :  { %103 = vrot.lane.b32.xlu1 %v330_v14, %s262_s1  ;;  %99 = vrot.lane.b32.xlu0 %v332_v15, %s262_s1 }
  0x3b   :  { %61 = vrot.lane.b32.xlu1 %v336_v16, %s262_s1  ;;  %59 = vrot.lane.b32.xlu0 %v338_v17, %s262_s1 }
  0x3f   :  { %65 = vrot.lane.b32.xlu1 %v316_v4, %s263_s8  ;;  %63 = vrot.lane.b32.xlu0 %v318_v5, %s263_s8 }
  0x43   :  { %69 = vrot.lane.b32.xlu1 %v336_v16, %s263_s8  ;;  %67 = vrot.lane.b32.xlu0 %v338_v17, %s263_s8 }
  0x47   :  { %107 = vrot.lane.b32.xlu1 %v332_v15, %s263_s8  ;;  %105 = vrot.lane.b32.xlu0 %v326_v11, %s263_s8 }
  0x4b   :  { %111 = vrot.lane.b32.xlu1 %v330_v14, %s263_s8  ;;  %109 = vrot.lane.b32.xlu0 %v324_v9, %s263_s8 }
  0x9d   :  { %v58_v18 = vpop.permute.xlu1 %57  ;;  %v56_v19 = vpop.permute.xlu0 %55 }
  0xa5   :  { %v102_v20 = vpop.permute.xlu1 %101  ;;  %v98_v21 = vpop.permute.xlu0 %97 }
  0xa6   :  { %v119_v22 = vsel %vm312_vm0, %v102_v20, %v324_v9  ;;  %v117_v23 = vsel %vm312_vm0, %v98_v21, %v326_v11 }
  0xa7   :  { %v121_v24 = vmul.f32 1.442695, %v117_v23  ;;  %v125_v25 = vmul.f32 1.442695, %v119_v22 }
  0xa9   :  { %v104_v26 = vpop.permute.xlu1 %103  ;;  %v100_v27 = vpop.permute.xlu0 %99  ;;  %177 = vpow2.f32 %v121_v24 }
  0xaa   :  { %v120_v28 = vsel %vm312_vm0, %v104_v26, %v330_v14  ;;  %v118_v29 = vsel %vm312_vm0, %v100_v27, %v332_v15  ;;  %179 = vpow2.f32 %v125_v25 }
  0xab   :  { %v123_v30 = vmul.f32 1.442695, %v118_v29  ;;  %v127_v31 = vmul.f32 1.442695, %v120_v28 }
  0xad   :  { %v62_v32 = vpop.permute.xlu1 %61  ;;  %v60_v33 = vpop.permute.xlu0 %59  ;;  %181 = vpow2.f32 %v123_v30 }
  0xae   :  { %183 = vpow2.f32 %v127_v31 }
  0xb1   :  { %v66_v34 = vpop.permute.xlu1 %65  ;;  %v64_v35 = vpop.permute.xlu0 %63 }
  0xb2   :  { %v73_v36 = vsel %vm312_vm0, %v56_v19, %v64_v35  ;;  %v74_v37 = vsel %vm312_vm0, %v58_v18, %v66_v34 }
  0xb3   :  { %v178_v40 = vpop.eup %177  ;;  %v85_v46 = vsub.f32 %v73_v36, %v318_v5  ;;  %v78_v49 = vadd.f32 %v74_v37, %v316_v4  ;;  %v86_v50 = vsub.f32 %v74_v37, %v316_v4  ;;  %v77_v51 = vadd.f32 %v73_v36, %v318_v5 }
  0xb4   :  { %v180_v43 = vpop.eup %179  ;;  %v129_v54 = vmul.f32 %v178_v40, %v44_v42 }
  0xb5   :  { %v70_v38 = vpop.permute.xlu1 %69  ;;  %v68_v39 = vpop.permute.xlu0 %67  ;;  %v89_v61 = vmul.f32 %v85_v46, %v45_v45  ;;  %v131_v0 = vmul.f32 %v180_v43, %v44_v42  ;;  %v82_v1 = vmul.f32 0.5, %v78_v49  ;;  %v90_v2 = vmul.f32 %v86_v50, %v45_v45 }
  0xb6   :  { %v76_v47 = vsel %vm312_vm0, %v62_v32, %v70_v38  ;;  %v75_v52 = vsel %vm312_vm0, %v60_v33, %v68_v39  ;;  %v81_v4 = vmul.f32 0.5, %v77_v51 }
  0xb7   :  { %v182_v48 = vpop.eup %181  ;;  %v88_v57 = vsub.f32 %v76_v47, %v336_v16  ;;  %v87_v62 = vsub.f32 %v75_v52, %v338_v17  ;;  %v80_v6 = vadd.f32 %v76_v47, %v336_v16  ;;  %v79_v7 = vadd.f32 %v75_v52, %v338_v17 }
  0xb8   :  { %v184_v56 = vpop.eup %183  ;;  %v130_v59 = vmul.f32 %v182_v48, %v44_v42 }
  0xb9   :  { %v108_v53 = vpop.permute.xlu1 %107  ;;  %v106_v55 = vpop.permute.xlu0 %105  ;;  %v132_v10 = vmul.f32 %v184_v56, %v44_v42  ;;  %v91_v20 = vmul.f32 %v87_v62, %v45_v45  ;;  %v84_v17 = vmul.f32 0.5, %v80_v6  ;;  %v83_v24 = vmul.f32 0.5, %v79_v7 }
  0xba   :  { %v114_v58 = vsel %vm312_vm0, %v332_v15, %v108_v53  ;;  %v113_v60 = vsel %vm312_vm0, %v326_v11, %v106_v55  ;;  %v92_v15 = vmul.f32 %v88_v57, %v45_v45 }
  0xbb   :  { %v133_v63 = vadd.f32 %v129_v54, %v113_v60  ;;  %v134_v5 = vadd.f32 %v130_v59, %v114_v58 }
  0xbd   :  { %v137_v8 = vmul.f32 %v133_v63, %v89_v61  ;;  %v112_v12 = vpop.permute.xlu1 %111  ;;  %v110_v13 = vpop.permute.xlu0 %109  ;;  %v138_v18 = vmul.f32 %v134_v5, %v90_v2 }
  0xbe   :  { %v116_v11 = vsel %vm312_vm0, %v330_v14, %v112_v12  ;;  %v115_v19 = vsel %vm312_vm0, %v324_v9, %v110_v13 }
  0xbf   :  { %v141_v21 = vadd.f32 %v137_v8, %v81_v4  ;;  %v136_v22 = vadd.f32 %v132_v10, %v116_v11  ;;  %v135_v16 = vadd.f32 %v131_v0, %v115_v19  ;;  %v142_v23 = vadd.f32 %v138_v18, %v82_v1 }
  0xc1   :  { %145 = vst [vmem:[#allocation7] sm:$0xff] %v141_v21  ;;  %v140_v25 = vmul.f32 %v136_v22, %v92_v15  ;;  %v139_v26 = vmul.f32 %v135_v16, %v91_v20  ;;  %146 = vst [vmem:[#allocation7 + $0x8] sm:$0xff] %v142_v23 }
  0xc3   :  { %v144_v27 = vadd.f32 %v140_v25, %v84_v17  ;;  %v143_v28 = vadd.f32 %v139_v26, %v83_v24 }
  0xc5   :  { %148 = vst [vmem:[#allocation7 + $0x18] sm:$0xff] %v144_v27  ;;  %147 = vst [vmem:[#allocation7 + $0x10] sm:$0xff] %v143_v28 }
  0xc6   :  { %153 = vsyncadd [#allocation4], 256  ;;  %s266_s9 = smov [#allocation7]  }
  0xc7   :  { %s154_s10 = sshll.u32 %s266_s9, 4  ;;  %s155_s10 = int_to_ptr.vmem [resolvable:$true] %s154_s10 }
  0xc8   :  { %s229_s11 = scalar_lea.vmem %s155_s10, 256  ;;  %s233_s12 = scalar_lea.vmem %s155_s10, 512 }
  0xc9   :  { %p230_p2 = scmp.ne.s32.totalorder %s155_s10, %s229_s11  ;;  %p234_p3 = scmp.lt.s32.totalorder %s155_s10, %s155_s10 }
  0xca   :  { %p235_p4 = scmp.lt.s32.totalorder %s233_s12, %s229_s11 }
  0xcc   :  { %p236_p5 = por %p235_p4, %p234_p3 }
  0xce   :  { %p237_p6 = pnand %p236_p5, %p230_p2 }
  0xd0   :  { %240 = shalt.err (!%p237_p6)
}
  0xd1   :  { %s241_s15 = scalar_lea.hbm %s411_s2, 256 }
  0xd2   :  { %p242_p7 = scmp.ne.s32.totalorder %s411_s2, %s241_s15  ;;  %p245_p8 = scmp.lt.u32.totalorder %s241_s15, %s411_s2 }
  0xd4   :  { %p247_p9 = pnand %p245_p8, %p242_p7 }
  0xd6   :  { %250 = shalt.err (!%p247_p9)
}
  0xd7   :  { %160 = dma.vmem_to_hbm [thread:$0]  %s155_s10, 256, %s411_s2, [#allocation4], %s258_s20, %s258_s20, %s259_s21  }
  0xd8   :  { %255 = dma.done.wait [#allocation4], 512  }
  0xd9   :  { %256 = vsyncadd [#allocation4], 4294966784 }
  0xda   :  { %164 = vsyncpa [#allocation3], 1 }
  0xdb   :  { %165 = vsyncpa [#allocation6], 1 }
  0xdc   :  { %166 = vsyncpa [#allocation4], 1 }

</bundles_post_ra>
